<compile_context>
chip_gen: v7x
topology: tpu7x:2x2x1
jax: 0.10.0
libtpu: 0.0.40
codegen_flags: <defaults>
</compile_context>

<pallas_src>
import functools

import jax
import jax.numpy as jnp
from jax import lax
from jax.experimental import pallas as pl
from jax.experimental.pallas import tpu as pltpu

_DEFAULT_VMEM_BUDGET = 10 * 1024 * 1024   # per-step live working set target


def _vmem_limit_bytes():
    # Explicit scoped-VMEM limit: ~3/4 of physical, capped.  Big enough for
    # the budgeted tiles on v5e/v6e (128 MiB phys) without over-asking v7x
    # (64 MiB phys).
    try:
        cap = int(pltpu.get_tpu_info().vmem_capacity_bytes)
    except Exception:
        cap = 64 * 1024 * 1024
    return int(min(cap * 3 // 4, 96 * 1024 * 1024))


def _pick_rows(T, row_bytes, budget_bytes, max_rows=None):
    """Even time-tile size: as large as the VMEM budget allows, capped so the
    grid keeps >= 2 time tiles (v7x megacore), preferring an exact divisor of
    T so the wrapper never pads/copies the activation."""
    cap = max(2, budget_bytes // max(row_bytes, 1))
    if max_rows is not None:
        cap = min(cap, max_rows)
    if T >= 4:
        cap = min(cap, -(-T // 2))          # keep at least two time tiles
    cap = min(cap, T)
    cap = max(2, (cap // 2) * 2)            # even: 2x2 pool never straddles
    d = cap
    while d >= 2:
        if T % d == 0:
            break
        d -= 2
    else:
        d = 0
    if d and 2 * d >= cap:                  # exact divisor, not too small
        return d
    return cap


def _conv_row_bytes(W, Cin, Cout, pool):
    """Per-time-row VMEM bytes of one conv grid step (tile sizing)."""
    inp = 2 * W * Cin * 2                   # double-buffered input block
    canvas = (W + 2) * Cin * 2              # zero-padded canvas scratch
    col = W * 9 * Cin * 2                   # im2col scratch
    acc = W * Cout * 4                      # f32 matmul result
    wo = W // 2 if pool else W
    out = (wo * Cout * 2) * (1 if pool else 2)
    return inp + canvas + col + acc + out


def _band_row_bytes(D, N):
    return 2 * D * 2 + D * 2 + N * 4 + 2 * N * 2


# ----------------------------------------------------------------------------
# Layer 1: banded matmul on the raw lane-dense (time, chan*freq) layout
# ----------------------------------------------------------------------------
def _conv1_band_kernel(x_ref, h_ref, m_ref, b_ref, o_ref, xp_ref):
    """One (batch, time-tile) grid step of VGG layer 1.

    x_ref : (1, 1, Tb, D)    raw feature rows, D = in_channel * freq (lanes)
    h_ref : (1, 1, 2, D)     time-halo rows (row above / below the tile)
    m_ref : (3, D, F*64)     banded layer-1 weights (freq taps folded in)
    b_ref : (1, F*64)        bias tiled per frequency (f32)
    o_ref : (1, 1, Tb, F*64) lane-merged layer-1 activation (bf16)
    xp_ref: (Tb+2, D)        halo/zero padded canvas (VMEM scratch)
    """
    Tb = x_ref.shape[2]
    xp_ref[0:1, :] = h_ref[0, 0, 0:1, :]
    xp_ref[1:Tb + 1, :] = x_ref[0, 0]
    xp_ref[Tb + 1:Tb + 2, :] = h_ref[0, 0, 1:2, :]

    y = jnp.dot(xp_ref[0:Tb, :], m_ref[0], preferred_element_type=jnp.float32)
    y = y + jnp.dot(xp_ref[1:Tb + 1, :], m_ref[1],
                    preferred_element_type=jnp.float32)
    y = y + jnp.dot(xp_ref[2:Tb + 2, :], m_ref[2],
                    preferred_element_type=jnp.float32)
    y = jnp.maximum(y + b_ref[0].astype(jnp.float32), 0.0)      # bias + ReLU
    o_ref[0, 0] = y.astype(o_ref.dtype)


def conv1_band_relu(x, m1, b1, *, budget_bytes, max_rows=None):
    """VGG layer 1 on the raw (B, T, in_channel*freq) features.

    Keeping chan*freq on the 128-lane axis avoids the ~64x VMEM/DMA blowup of
    putting the 1-3 wide channel dim on lanes; the 3x3 conv becomes 3 banded
    (D, freq*64) matmuls.  Output is the lane-merged (B, T, freq*64) map.
    """
    B, T, D = x.shape
    N = m1.shape[-1]
    Tb = _pick_rows(T, _band_row_bytes(D, N), budget_bytes, max_rows=max_rows)
    nT = -(-T // Tb)
    Tpad = nT * Tb
    if Tpad != T:
        # TODO(synk): mask the ragged tail in-kernel instead of padding here.
        x = jnp.pad(x, ((0, 0), (0, Tpad - T), (0, 0)))

    zrow = jnp.zeros((B, 1, D), x.dtype)
    tops = jnp.concatenate([zrow, x[:, Tb - 1:Tpad - 1:Tb]], axis=1)
    bots = jnp.concatenate([x[:, Tb:Tpad:Tb], zrow], axis=1)
    halo = jnp.stack([tops, bots], axis=2)               # (B, nT, 2, D)
    x4 = x.reshape(B, nT, Tb, D)                          # time-tile = full dim

    out = pl.pallas_call(
        _conv1_band_kernel,
        out_shape=jax.ShapeDtypeStruct((B, nT, Tb, N), x.dtype),
        grid=(B, nT),
        in_specs=[
            pl.BlockSpec((1, 1, Tb, D), lambda bi, ti: (bi, ti, 0, 0)),
            pl.BlockSpec((1, 1, 2, D), lambda bi, ti: (bi, ti, 0, 0)),
            pl.BlockSpec(m1.shape, lambda bi, ti: (0, 0, 0)),
            pl.BlockSpec((1, N), lambda bi, ti: (0, 0)),
        ],
        out_specs=pl.BlockSpec((1, 1, Tb, N), lambda bi, ti: (bi, ti, 0, 0)),
        scratch_shapes=[pltpu.VMEM((Tb + 2, D), x.dtype)],
        compiler_params=pltpu.CompilerParams(
            dimension_semantics=("parallel", "parallel"),
            vmem_limit_bytes=_vmem_limit_bytes()),
    )(x4, halo, m1, b1)

    out = out.reshape(B, nT * Tb, N)
    if Tpad != T:
        out = out[:, :T]
    return out


# ----------------------------------------------------------------------------
# Layers 2-4: fused 3x3 conv + bias + ReLU (+ optional fused 2x2 max-pool)
# ----------------------------------------------------------------------------
def _conv3x3_kernel(x_ref, h_ref, w_ref, b_ref, o_ref, xp_ref, col_ref, *,
                    width, cin, pool, in_merged, out_merged):
    """One (batch, time-tile) grid step.

    x_ref : (1,1,Tb,W*Cin) if in_merged else (1,Tb,W,Cin)   bf16 tile
    h_ref : (1,1,2,W*Cin)  if in_merged else (1,2,W,Cin)    time-halo rows
    w_ref : (9*Cin, Cout)  bf16 weights, tap-major (single big-K fold)
    b_ref : (1, Cout)      f32 bias
    o_ref : (1,1,To,Wo*Cout) if out_merged else (1,To,Wo,Cout)
    xp_ref: (Tb+2, W+2, Cin)   zero-padded activation canvas (VMEM scratch)
    col_ref:(Tb, W, 9*Cin)     im2col scratch -> one K=9*Cin MXU contraction
    """
    W, Cin = width, cin
    Cout = w_ref.shape[-1]
    Tb = x_ref.shape[2] if in_merged else x_ref.shape[1]

    # ---- assemble the zero-padded canvas in VMEM (no HBM padding copies) ----
    # Freq border columns are rewritten every step: the scratch is
    # uninitialized and gating on the first grid step is unsafe once the
    # "parallel" axes are split across TensorCores; cost is 2 narrow stores.
    zcol = jnp.zeros((Tb + 2, 1, Cin), xp_ref.dtype)
    xp_ref[:, 0:1, :] = zcol
    xp_ref[:, W + 1:W + 2, :] = zcol
    if in_merged:
        xp_ref[1:Tb + 1, 1:W + 1, :] = x_ref[0, 0].reshape(Tb, W, Cin)
        xp_ref[0:1, 1:W + 1, :] = h_ref[0, 0, 0:1, :].reshape(1, W, Cin)
        xp_ref[Tb + 1:Tb + 2, 1:W + 1, :] = h_ref[0, 0, 1:2, :].reshape(1, W, Cin)
    else:
        xp_ref[1:Tb + 1, 1:W + 1, :] = x_ref[0]
        xp_ref[0:1, 1:W + 1, :] = h_ref[0, 0:1]
        xp_ref[Tb + 1:Tb + 2, 1:W + 1, :] = h_ref[0, 1:2]
    # TODO(synk): manual double-buffering could land the input DMA directly in
    # the canvas interior and drop the per-step Tb*W*Cin copy above.

    # ---- im2col into one (Tb, W, 9*Cin) scratch, then ONE big-K MXU dot -----
    # (replaces the old jnp.concatenate temporary; K = 576/1152 keeps the
    # 256-deep v6e/v7x MXU contraction full instead of 25-50% at K = Cin).
    for dh in range(3):
        for dw in range(3):
            tap = 3 * dh + dw
            col_ref[:, :, tap * Cin:(tap + 1) * Cin] = \
                xp_ref[dh:dh + Tb, dw:dw + W, :]

    m = Tb * W
    y = jnp.dot(col_ref[...].reshape(m, 9 * Cin), w_ref[...],
                preferred_element_type=jnp.float32)
    y = jnp.maximum(y + b_ref[0].astype(jnp.float32), 0.0)       # bias + ReLU
    y = y.astype(o_ref.dtype).reshape(Tb, W, Cout)                # bf16 pre-pool

    if pool:  # fused 2x2 / stride-2 max-pool, in bf16 (max commutes with cast)
        To, Wo = Tb // 2, W // 2
        y = y.reshape(To, 2, W, Cout)
        y = jnp.maximum(y[:, 0], y[:, 1])                         # time pairs
        y = y[:, :2 * Wo, :].reshape(To, Wo, 2, Cout)
        y = jnp.maximum(y[:, :, 0, :], y[:, :, 1, :])             # freq pairs
    else:
        To, Wo = Tb, W

    if out_merged:
        o_ref[0, 0] = y.reshape(To, Wo * Cout)                    # lane-dense
    else:
        o_ref[0] = y


def conv3x3_relu(x, w, b, *, width, cin, pool, in_merged, out_merged,
                 budget_bytes, max_rows=None):
    """3x3/stride-1/pad-1 conv + bias + ReLU (+ optional fused 2x2 max-pool).

    x : (B, T, width*cin) bf16 if in_merged else (B, T, width, cin) bf16
    w : (9*cin, Cout) bf16 tap-major fold of the HWIO 3x3 kernel
    b : (1, Cout) f32
    """
    B, T = x.shape[0], x.shape[1]
    W, Cin = width, cin
    Cout = w.shape[-1]

    Tb = _pick_rows(T, _conv_row_bytes(W, Cin, Cout, pool), budget_bytes,
                    max_rows=max_rows)
    nT = -(-T // Tb)
    Tpad = nT * Tb
    if Tpad != T:
        # Only hit when no reasonable divisor of T exists.
        # TODO(synk): mask the ragged tail in-kernel instead of pad + slice.
        pad = [(0, 0), (0, Tpad - T)] + [(0, 0)] * (x.ndim - 2)
        x = jnp.pad(x, pad)

    # Per-tile halo rows (row just above / below each tile, zeros at sequence
    # ends) keep the main-tile blocks non-overlapping and auto-pipelined.
    zrow = jnp.zeros((B, 1) + x.shape[2:], x.dtype)
    tops = jnp.concatenate([zrow, x[:, Tb - 1:Tpad - 1:Tb]], axis=1)
    bots = jnp.concatenate([x[:, Tb:Tpad:Tb], zrow], axis=1)
    halo = jnp.stack([tops, bots], axis=2)                  # (B, nT, 2, ...)

    To = Tb // 2 if pool else Tb
    Wo = W // 2 if pool else W

    if in_merged:
        # Time tile becomes a full array dim: lane axis stays W*Cin dense and
        # the (8,128) block rule holds for any Tb.
        x = x.reshape(B, nT, Tb, W * Cin)
        x_spec = pl.BlockSpec((1, 1, Tb, W * Cin), lambda bi, ti: (bi, ti, 0, 0))
        h_spec = pl.BlockSpec((1, 1, 2, W * Cin), lambda bi, ti: (bi, ti, 0, 0))
    else:
        halo = halo.reshape(B, 2 * nT, W, Cin)
        x_spec = pl.BlockSpec((1, Tb, W, Cin), lambda bi, ti: (bi, ti, 0, 0))
        h_spec = pl.BlockSpec((1, 2, W, Cin), lambda bi, ti: (bi, ti, 0, 0))

    if out_merged:
        out_shape = jax.ShapeDtypeStruct((B, nT, To, Wo * Cout), x.dtype)
        o_spec = pl.BlockSpec((1, 1, To, Wo * Cout), lambda bi, ti: (bi, ti, 0, 0))
    else:
        out_shape = jax.ShapeDtypeStruct((B, nT * To, Wo, Cout), x.dtype)
        o_spec = pl.BlockSpec((1, To, Wo, Cout), lambda bi, ti: (bi, ti, 0, 0))

    out = pl.pallas_call(
        functools.partial(_conv3x3_kernel, width=W, cin=Cin, pool=pool,
                          in_merged=in_merged, out_merged=out_merged),
        out_shape=out_shape,
        grid=(B, nT),
        in_specs=[x_spec, h_spec,
                  pl.BlockSpec((9 * Cin, Cout), lambda bi, ti: (0, 0)),
                  pl.BlockSpec((1, Cout), lambda bi, ti: (0, 0))],
        out_specs=o_spec,
        scratch_shapes=[pltpu.VMEM((Tb + 2, W + 2, Cin), x.dtype),
                        pltpu.VMEM((Tb, W, 9 * Cin), x.dtype)],
        compiler_params=pltpu.CompilerParams(
            dimension_semantics=("parallel", "parallel"),
            vmem_limit_bytes=_vmem_limit_bytes()),
    )(x, halo, w, b)

    if out_merged:
        out = out.reshape(B, nT * To, Wo * Cout)
    Tvalid = T // 2 if pool else T
    if nT * To != Tvalid:
        out = out[:, :Tvalid]
    return out


# ----------------------------------------------------------------------------
# Module
# ----------------------------------------------------------------------------
class VGGExtractorPallas:
    """JAX/Pallas port of VGGExtractor."""

    def __init__(self, input_dim, key,
                 vmem_budget_bytes=_DEFAULT_VMEM_BUDGET, max_block_rows=None):
        self.init_dim = 64
        self.hide_dim = 128
        self.vmem_budget_bytes = vmem_budget_bytes
        self.max_block_rows = max_block_rows
        in_channel, freq_dim, out_dim = self.check_dim(input_dim)
        self.in_channel = in_channel
        self.freq_dim = freq_dim
        self.out_dim = out_dim

        # Deterministic synthetic parameters, stored HWIO (PyTorch OIHW weight
        # (Cout, Cin, 3, 3) corresponds via transpose(2, 3, 1, 0)).
        ks = jax.random.split(key, 8)
        scale = 0.1

        def wb(kw, kb, cin, cout):
            w = scale * jax.random.normal(kw, (3, 3, cin, cout), jnp.float32)
            b = scale * jax.random.normal(kb, (cout,), jnp.float32)
            return w, b

        self.w1, self.b1 = wb(ks[0], ks[1], in_channel, self.init_dim)
        self.w2, self.b2 = wb(ks[2], ks[3], self.init_dim, self.init_dim)
        self.w3, self.b3 = wb(ks[4], ks[5], self.init_dim, self.hide_dim)
        self.w4, self.b4 = wb(ks[6], ks[7], self.hide_dim, self.hide_dim)

        # Kernel-side parameter forms (built once).
        self.m1 = self._band_weights(self.w1).astype(jnp.bfloat16)
        self.b1t = jnp.tile(self.b1, (self.freq_dim,)).reshape(1, -1)
        self.w2k = self.w2.reshape(9 * self.init_dim, self.init_dim).astype(jnp.bfloat16)
        self.w3k = self.w3.reshape(9 * self.init_dim, self.hide_dim).astype(jnp.bfloat16)
        self.w4k = self.w4.reshape(9 * self.hide_dim, self.hide_dim).astype(jnp.bfloat16)
        self.b2k = self.b2.reshape(1, -1)
        self.b3k = self.b3.reshape(1, -1)
        self.b4k = self.b4.reshape(1, -1)

    def _band_weights(self, w):
        """(3,3,Cin,64) HWIO -> (3, Cin*F, F*64) banded matrices.  Freq taps
        and SAME freq-padding fold into a block band so layer 1 runs as plain
        lane-dense matmuls on the raw (time, chan*freq) input."""
        F_ = self.freq_dim
        cin, cout = w.shape[2], w.shape[3]
        mats = []
        for dh in range(3):
            m = jnp.zeros((cin, F_, F_, cout), jnp.float32)
            for dw in range(3):
                diag = jnp.eye(F_, k=1 - dw, dtype=jnp.float32)   # g = f+dw-1
                m = m + jnp.einsum('gf,co->cgfo', diag, w[dh, dw])
            mats.append(m.reshape(cin * F_, F_ * cout))
        return jnp.stack(mats)

    def check_dim(self, input_dim):
        if input_dim % 13 == 0:
            return int(input_dim / 13), 13, (13 // 4) * self.hide_dim
        elif input_dim % 40 == 0:
            return int(input_dim / 40), 40, (40 // 4) * self.hide_dim
        else:
            raise ValueError(
                "Acoustic feature dimension for VGG should be 13/26/39(MFCC) "
                "or 40/80/120(Fbank) but got :", input_dim)

    def view_input(self, feature, feat_len):
        feat_len = feat_len // 4
        ts = feature.shape[1]
        if ts % 4 != 0:
            feature = feature[:, :ts - (ts % 4), :]
        bs, ts, _ = feature.shape
        # (B, T, C*F) -> (B, T, C, F) -> NHWC (B, T, F, C)
        feature = feature.reshape(bs, ts, self.in_channel, self.freq_dim)
        feature = jnp.transpose(feature, (0, 1, 3, 2))
        return feature, feat_len

    def forward(self, feature, feat_len):
        feat_len = feat_len // 4
        ts = feature.shape[1]
        if ts % 4 != 0:
            feature = feature[:, :ts - (ts % 4), :]
        F_ = self.freq_dim
        budget = self.vmem_budget_bytes
        mr = self.max_block_rows

        x = feature.astype(jnp.bfloat16)                  # (B, T, Cin*F) raw
        # Layer 1: banded matmul on the lane-dense raw layout.
        x = conv1_band_relu(x, self.m1, self.b1t,
                            budget_bytes=budget, max_rows=mr)   # (B,T,F*64)
        # Layer 2 (+pool): merged lane-dense 64-ch in/out.
        x = conv3x3_relu(x, self.w2k, self.b2k, width=F_, cin=self.init_dim,
                         pool=True, in_merged=True, out_merged=True,
                         budget_bytes=budget, max_rows=mr)  # (B,T/2,(F//2)*64)
        # Layer 3: merged 64-ch in, NHWC 128-ch out (128 lanes already dense).
        x = conv3x3_relu(x, self.w3k, self.b3k, width=F_ // 2, cin=self.init_dim,
                         pool=False, in_merged=True, out_merged=False,
                         budget_bytes=budget, max_rows=mr)  # (B,T/2,F//2,128)
        # Layer 4 (+pool): NHWC 128-ch.
        x = conv3x3_relu(x, self.w4k, self.b4k, width=F_ // 2, cin=self.hide_dim,
                         pool=True, in_merged=False, out_merged=False,
                         budget_bytes=budget, max_rows=mr)  # (B,T/4,F//4,128)

        # (B, T//4, F//4, 128) -> PyTorch's channel-major (B, T//4, 128*F//4).
        B, Tq, Fq, C = x.shape
        out = jnp.transpose(x, (0, 1, 3, 2)).reshape(B, Tq, C * Fq)
        out = out.astype(jnp.float32)
        assert C * Fq == self.out_dim
        return out, feat_len


# ----------------------------------------------------------------------------
# Pure-JAX reference (same bf16 quantization points, for correctness check)
# ----------------------------------------------------------------------------
def _reference_forward(m, feature, feat_len):
    x, feat_len = m.view_input(feature, feat_len)
    x = x.astype(jnp.bfloat16)

    def layer(x, w, b, pool):
        y = lax.conv_general_dilated(
            x, w.astype(jnp.bfloat16), window_strides=(1, 1), padding="SAME",
            dimension_numbers=("NHWC", "HWIO", "NHWC"),
            preferred_element_type=jnp.float32)
        y = jnp.maximum(y + b, 0.0)
        if pool:
            bsz, h, wd, c = y.shape
            y = y[:, :2 * (h // 2), :2 * (wd // 2), :]
            y = y.reshape(bsz, h // 2, 2, wd // 2, 2, c).max(axis=(2, 4))
        return y.astype(jnp.bfloat16)

    x = layer(x, m.w1, m.b1, False)
    x = layer(x, m.w2, m.b2, True)
    x = layer(x, m.w3, m.b3, False)
    x = layer(x, m.w4, m.b4, True)
    B, Tq, Fq, C = x.shape
    out = jnp.transpose(x, (0, 1, 3, 2)).reshape(B, Tq, C * Fq)
    return out.astype(jnp.float32), feat_len


# ----------------------------------------------------------------------------
if __name__ == "__main__":
    key = jax.random.PRNGKey(0)
    k_in1, k_p1, k_in2, k_p2 = jax.random.split(key, 4)

    # --- Test 1: MFCC-style input (26 -> in_channel=2, freq=13, out_dim=384).
    # --- Exercises the exact-divisor tiling + multi-tile halo path. -----------
    B, T, D = 2, 8, 26
    feature = jax.random.normal(k_in1, (B, T, D), jnp.float32)
    feat_len = jnp.array([8, 6], dtype=jnp.int32)
    model = VGGExtractorPallas(D, k_p1)
    out, out_len = model.forward(feature, feat_len)
    out = jax.block_until_ready(out)
    assert out.shape == (B, T // 4, model.out_dim), out.shape
    assert int(out_len[0]) == 2 and int(out_len[1]) == 1
    ref, _ = _reference_forward(model, feature, feat_len)
    ref = jax.block_until_ready(ref)
    assert jnp.allclose(out, ref, atol=5e-2, rtol=5e-2), (
        float(jnp.max(jnp.abs(out - ref))))

    # --- Test 2: Fbank-style input (80 -> in_channel=2, freq=40) with a small
    # --- max_block_rows so multi-tile halos AND the ragged pad+slice fallback
    # --- path are exercised on every layer. -----------------------------------
    B2, T2, D2 = 2, 28, 80
    feature2 = jax.random.normal(k_in2, (B2, T2, D2), jnp.float32)
    feat_len2 = jnp.array([28, 21], dtype=jnp.int32)
    model2 = VGGExtractorPallas(D2, k_p2, max_block_rows=12)
    out2, out_len2 = model2.forward(feature2, feat_len2)
    out2 = jax.block_until_ready(out2)
    assert out2.shape == (B2, T2 // 4, model2.out_dim), out2.shape
    ref2, _ = _reference_forward(model2, feature2, feat_len2)
    ref2 = jax.block_until_ready(ref2)
    assert jnp.allclose(out2, ref2, atol=5e-2, rtol=5e-2), (
        float(jnp.max(jnp.abs(out2 - ref2))))

    print("KERNEL_OK")
</pallas_src>

<mosaic_0001>
module attributes {stable_mosaic.version = 11 : i64} {
  func.func @_conv1_band_kernel(%arg0: i32, %arg1: i32, %arg2: memref<1x1x4x26xbf16, #tpu.memory_space<vmem>>, %arg3: memref<1x1x2x26xbf16, #tpu.memory_space<vmem>>, %arg4: memref<3x26x832xbf16, #tpu.memory_space<vmem>>, %arg5: memref<1x832xf32, #tpu.memory_space<vmem>>, %arg6: memref<1x1x4x832xbf16, #tpu.memory_space<vmem>>, %arg7: memref<6x26xbf16, #tpu.memory_space<vmem>>) attributes {dimension_semantics = [#tpu.dimension_semantics<parallel>, #tpu.dimension_semantics<parallel>], iteration_bounds = array<i64: 2, 2>, scalar_prefetch = 0 : i64, scratch_operands = 1 : i64, tpu.core_type = #tpu.core_type<tc>, window_params = [{transform_indices = @transform_0, window_bounds = array<i64: 1, 1, 4, 26>}, {transform_indices = @transform_1, window_bounds = array<i64: 1, 1, 2, 26>}, {pipeline_mode = #tpu.pipeline_mode<synchronous>, transform_indices = @transform_2, window_bounds = array<i64: 3, 26, 832>}, {pipeline_mode = #tpu.pipeline_mode<synchronous>, transform_indices = @transform_3, window_bounds = array<i64: 1, 832>}, {transform_indices = @transform_4, window_bounds = array<i64: 1, 1, 4, 832>}]} {
    %c0 = arith.constant 0 : index
    %c0_0 = arith.constant 0 : index
    %c0_1 = arith.constant 0 : index
    %c0_2 = arith.constant 0 : index
    %0 = vector.load %arg3[%c0, %c0_0, %c0_1, %c0_2] : memref<1x1x2x26xbf16, #tpu.memory_space<vmem>>, vector<1x1x1x26xbf16>
    %1 = vector.shape_cast %0 : vector<1x1x1x26xbf16> to vector<1x26xbf16>
    %c0_3 = arith.constant 0 : index
    %c0_4 = arith.constant 0 : index
    %2 = vector.load %arg7[%c0_3, %c0_4] : memref<6x26xbf16, #tpu.memory_space<vmem>>, vector<1x26xbf16>
    tpu.vector_store %arg7[%c0_3, %c0_4], %1 {strides = array<i32>} : memref<6x26xbf16, #tpu.memory_space<vmem>>, vector<1x26xbf16>,
    %c0_5 = arith.constant 0 : index
    %c0_6 = arith.constant 0 : index
    %c0_7 = arith.constant 0 : index
    %c0_8 = arith.constant 0 : index
    %3 = vector.load %arg2[%c0_5, %c0_6, %c0_7, %c0_8] : memref<1x1x4x26xbf16, #tpu.memory_space<vmem>>, vector<1x1x4x26xbf16>
    %4 = vector.shape_cast %3 : vector<1x1x4x26xbf16> to vector<4x26xbf16>
    %c1 = arith.constant 1 : index
    %c0_9 = arith.constant 0 : index
    %5 = vector.load %arg7[%c1, %c0_9] : memref<6x26xbf16, #tpu.memory_space<vmem>>, vector<4x26xbf16>
    tpu.vector_store %arg7[%c1, %c0_9], %4 {strides = array<i32>} : memref<6x26xbf16, #tpu.memory_space<vmem>>, vector<4x26xbf16>,
    %c0_10 = arith.constant 0 : index
    %c0_11 = arith.constant 0 : index
    %c1_12 = arith.constant 1 : index
    %c0_13 = arith.constant 0 : index
    %6 = vector.load %arg3[%c0_10, %c0_11, %c1_12, %c0_13] : memref<1x1x2x26xbf16, #tpu.memory_space<vmem>>, vector<1x1x1x26xbf16>
    %7 = vector.shape_cast %6 : vector<1x1x1x26xbf16> to vector<1x26xbf16>
    %c5 = arith.constant 5 : index
    %c0_14 = arith.constant 0 : index
    %8 = vector.load %arg7[%c5, %c0_14] : memref<6x26xbf16, #tpu.memory_space<vmem>>, vector<1x26xbf16>
    tpu.vector_store %arg7[%c5, %c0_14], %7 {strides = array<i32>} : memref<6x26xbf16, #tpu.memory_space<vmem>>, vector<1x26xbf16>,
    %c0_15 = arith.constant 0 : index
    %c0_16 = arith.constant 0 : index
    %9 = vector.load %arg7[%c0_15, %c0_16] : memref<6x26xbf16, #tpu.memory_space<vmem>>, vector<4x26xbf16>
    %c0_17 = arith.constant 0 : index
    %c0_18 = arith.constant 0 : index
    %c0_19 = arith.constant 0 : index
    %10 = vector.load %arg4[%c0_17, %c0_18, %c0_19] : memref<3x26x832xbf16, #tpu.memory_space<vmem>>, vector<1x26x832xbf16>
    %11 = vector.shape_cast %10 : vector<1x26x832xbf16> to vector<26x832xbf16>
    %cst = arith.constant dense<0.000000e+00> : vector<4x832xf32>
    %12 = tpu.matmul %9, %11, %cst {dimension_numbers = #tpu.dot_dimension_numbers<[1], [0], [0], [1], [0, 0, 1, 1], [], []>} : vector<4x26xbf16>, vector<26x832xbf16>, vector<4x832xf32> -> vector<4x832xf32>
    %c1_20 = arith.constant 1 : index
    %c0_21 = arith.constant 0 : index
    %13 = vector.load %arg7[%c1_20, %c0_21] : memref<6x26xbf16, #tpu.memory_space<vmem>>, vector<4x26xbf16>
    %c1_22 = arith.constant 1 : index
    %c0_23 = arith.constant 0 : index
    %c0_24 = arith.constant 0 : index
    %14 = vector.load %arg4[%c1_22, %c0_23, %c0_24] : memref<3x26x832xbf16, #tpu.memory_space<vmem>>, vector<1x26x832xbf16>
    %15 = vector.shape_cast %14 : vector<1x26x832xbf16> to vector<26x832xbf16>
    %cst_25 = arith.constant dense<0.000000e+00> : vector<4x832xf32>
    %16 = tpu.matmul %13, %15, %cst_25 {dimension_numbers = #tpu.dot_dimension_numbers<[1], [0], [0], [1], [0, 0, 1, 1], [], []>} : vector<4x26xbf16>, vector<26x832xbf16>, vector<4x832xf32> -> vector<4x832xf32>
    %17 = arith.addf %12, %16 : vector<4x832xf32>
    %c2 = arith.constant 2 : index
    %c0_26 = arith.constant 0 : index
    %18 = vector.load %arg7[%c2, %c0_26] : memref<6x26xbf16, #tpu.memory_space<vmem>>, vector<4x26xbf16>
    %c2_27 = arith.constant 2 : index
    %c0_28 = arith.constant 0 : index
    %c0_29 = arith.constant 0 : index
    %19 = vector.load %arg4[%c2_27, %c0_28, %c0_29] : memref<3x26x832xbf16, #tpu.memory_space<vmem>>, vector<1x26x832xbf16>
    %20 = vector.shape_cast %19 : vector<1x26x832xbf16> to vector<26x832xbf16>
    %cst_30 = arith.constant dense<0.000000e+00> : vector<4x832xf32>
    %21 = tpu.matmul %18, %20, %cst_30 {dimension_numbers = #tpu.dot_dimension_numbers<[1], [0], [0], [1], [0, 0, 1, 1], [], []>} : vector<4x26xbf16>, vector<26x832xbf16>, vector<4x832xf32> -> vector<4x832xf32>
    %22 = arith.addf %17, %21 : vector<4x832xf32>
    %c0_31 = arith.constant 0 : index
    %c0_32 = arith.constant 0 : index
    %23 = vector.load %arg5[%c0_31, %c0_32] : memref<1x832xf32, #tpu.memory_space<vmem>>, vector<1x832xf32>
    %24 = vector.shape_cast %23 : vector<1x832xf32> to vector<832xf32>
    %25 = vector.shape_cast %24 : vector<832xf32> to vector<1x832xf32>
    %26 = vector.broadcast %25 : vector<1x832xf32> to vector<4x832xf32>
    %27 = arith.addf %22, %26 : vector<4x832xf32>
    %cst_33 = arith.constant 0.000000e+00 : f32
    %28 = vector.broadcast %cst_33 : f32 to vector<4x832xf32>
    %29 = arith.maximumf %27, %28 : vector<4x832xf32>
    %30 = arith.truncf %29 : vector<4x832xf32> to vector<4x832xbf16>
    %c0_34 = arith.constant 0 : index
    %c0_35 = arith.constant 0 : index
    %c0_36 = arith.constant 0 : index
    %c0_37 = arith.constant 0 : index
    %31 = vector.load %arg6[%c0_34, %c0_35, %c0_36, %c0_37] : memref<1x1x4x832xbf16, #tpu.memory_space<vmem>>, vector<1x1x4x832xbf16>
    %32 = vector.shape_cast %31 : vector<1x1x4x832xbf16> to vector<4x832xbf16>
    %33 = vector.shape_cast %30 : vector<4x832xbf16> to vector<1x1x4x832xbf16>
    tpu.vector_store %arg6[%c0_34, %c0_35, %c0_36, %c0_37], %33 {strides = array<i32>} : memref<1x1x4x832xbf16, #tpu.memory_space<vmem>>, vector<1x1x4x832xbf16>,
    return
  }
  func.func @transform_0(%arg0: i32, %arg1: i32) -> (i32, i32, i32, i32) {
    %c0_i32 = arith.constant 0 : i32
    %c0_i32_0 = arith.constant 0 : i32
    %c0_i32_1 = arith.constant 0 : i32
    return %arg0, %arg1, %c0_i32, %c0_i32_0 : i32, i32, i32, i32
  }
  func.func @transform_1(%arg0: i32, %arg1: i32) -> (i32, i32, i32, i32) {
    %c0_i32 = arith.constant 0 : i32
    %c0_i32_0 = arith.constant 0 : i32
    %c0_i32_1 = arith.constant 0 : i32
    return %arg0, %arg1, %c0_i32, %c0_i32_0 : i32, i32, i32, i32
  }
  func.func @transform_2(%arg0: i32, %arg1: i32) -> (i32, i32, i32) {
    %c0_i32 = arith.constant 0 : i32
    %c0_i32_0 = arith.constant 0 : i32
    %c0_i32_1 = arith.constant 0 : i32
    %c0_i32_2 = arith.constant 0 : i32
    return %c0_i32, %c0_i32_0, %c0_i32_1 : i32, i32, i32
  }
  func.func @transform_3(%arg0: i32, %arg1: i32) -> (i32, i32) {
    %c0_i32 = arith.constant 0 : i32
    %c0_i32_0 = arith.constant 0 : i32
    %c0_i32_1 = arith.constant 0 : i32
    return %c0_i32, %c0_i32_0 : i32, i32
  }
  func.func @transform_4(%arg0: i32, %arg1: i32) -> (i32, i32, i32, i32) {
    %c0_i32 = arith.constant 0 : i32
    %c0_i32_0 = arith.constant 0 : i32
    %c0_i32_1 = arith.constant 0 : i32
    return %arg0, %arg1, %c0_i32, %c0_i32_0 : i32, i32, i32, i32
  }
}

</mosaic_0001>

<bundles_post_ra>
// kernel: tpu_custom_call.1
= control target key start
LH: loop header
LB: loop body
LE: loop exit
PB: predicated region body
PF: predicated region fallthrough
CT: control target
= control target key end

     0   :  { %s2282_s0 = inlined_call_operand.hbm [shape: bf16[2,2,4,26], index: 0, kind: input, shape index: {}]   ;;  %s2283_s1 = inlined_call_operand.hbm [shape: bf16[2,2,2,26], index: 1, kind: input, shape index: {}]   ;;  %s2284_s2 = inlined_call_operand.hbm [shape: bf16[3,26,832], index: 2, kind: input, shape index: {}]   ;;  %s2285_s3 = inlined_call_operand.vmem [shape: f32[1,832], index: 3, kind: input, shape index: {}]   ;;  %s2286_s4 = inlined_call_operand.hbm [shape: bf16[2,2,4,832], index: 4, kind: output, shape index: {}]  }
   0x1   :  { %2295 = sst [smem:[#allocation17_spill]] %s2284_s2 }
   0x2   :  { %2296 = sst [smem:[#allocation18_spill]] %s2286_s4 }
   0x3   :  { %9 = vsyncpa [#allocation4], 0 }
   0x4   :  { %11 = vsyncpa [#allocation4 + $0x1], 0 }
   0x5   :  { %12 = vsyncpa [#allocation7], 0 }
   0x6   :  { %14 = vsyncpa [#allocation7 + $0x1], 0 }
   0x7   :  { %15 = vsyncpa [#allocation5], 0 }
   0x8   :  { %17 = vsyncpa [#allocation5 + $0x1], 0  ;;  %s1928_s15 = smov 0   ;;  %s1930_s16 = smov 0  }
   0x9   :  { %s1932_s17 = smov 0   ;;  %s1934_s18 = smov 0  }
   0xa   :  { %s1936_s19 = smov 0   ;;  %s1938_s20 = smov 0  }
   0xb   :  { %s1940_s21 = smov 0   ;;  %s1942_s22 = smov 0  }
   0xc LB: > { %2297 = sst [smem:[#allocation14_spill]] %s1862_s15  ;;  %s1969_s23 = sadd.s32 4294967295, %s1890_s22   ;;  %s1890_s22 = sphi %s1942_s22, %s23_s22   ;;  %s1886_s21 = sphi %s1940_s21, %s2325_s21   ;;  %s1882_s20 = sphi %s1938_s20, %s2324_s20   ;;  %s1878_s19 = sphi %s1936_s19, %s2323_s19   ;;  %s1874_s18 = sphi %s1934_s18, %s2322_s18   ;;  %s1870_s17 = sphi %s1932_s17, %s2321_s17   ;;  %s1866_s16 = sphi %s1930_s16, %s2320_s16   ;;  %s1862_s15 = sphi %s1928_s15, %s2319_s15  }
   0xd   : > { %s1412_s24 = sadd.s32 4294967294, %s1890_s22   ;;  %p57_p0 = scmp.ne.s32.totalorder %s1866_s16, %s1862_s15 }
   0xe   : > { %p2287_p1 = scmp.eq.s32.totalorder %s1969_s23, 0  ;;  %p159_p3 = scmp.eq.s32.totalorder %s1412_s24, 3 }
   0xf   : > { %p1413_p5 = scmp.ge.s32.totalorder %s1890_s22, 1  ;;  %p166_p7 = scmp.lt.s32.totalorder %s1890_s22, 5 }
  0x10   : > { %p1978_p4 = por %p2287_p1, %p57_p0  ;;  %p1983_p6 = por %p159_p3, %p57_p0 }
  0x11   : > { %p1988_p8 = pnand %p1413_p5, %p166_p7  ;;  %s1892_s28 = smov [#allocation8]  }
  0x12   : > { %s2298_s25 = scalar_select %p1978_p4, 1, 0 }
  0x13   : > { %s2299_s26 = scalar_select %p1983_p6, 1, 0 }
  0x14   : > { %s2301_s27 = scalar_select %p1988_p8, 1, 0 }
  0x15   : > { %2300 = sst [smem:[#allocation15_spill]] %s2299_s26  ;;  %s178_s29 = sshll.u32 %s1892_s28, 4  ;;  %s179_s29 = int_to_ptr.vmem [resolvable:$true] %s178_s29 }
  0x16   : > { %p1542_p9 = pneg %p1988_p8  ;;  %s2303_s2 = sld [smem:[#allocation17_spill]] }
  0x18   : > { %p1996_p10 = pnand %p1542_p9, %p2287_p1 }
  0x1a   : > { %p1698_p12 = pneg %p1996_p10 }
  0x1c   : > { %s1696_s7 = scalar_lea.hbm %s2303_s2, 5376 }
  0x1d   : > { %p1697_p11 = scmp.ne.s32.totalorder %s2303_s2, %s1696_s7  ;;  %p1703_p3 = scmp.lt.u32.totalorder %s1696_s7, %s2303_s2 }
  0x1f   : > { %p1699_p13 = pnand %p1698_p12, %p1697_p11 }
  0x21   : > { %p1700_p0 = pneg %p1699_p13 }
  0x23   : > { %p1705_p5 = pnand %p1703_p3, %p1700_p0 }
  0x25   : > { %1708 = shalt.err (!%p1705_p5)
}
  0x26   : > { %s1709_s12 = scalar_lea.vmem %s179_s29, 5376  ;;  %p1717_p2 = scmp.lt.s32.totalorder %s179_s29, %s179_s29 }
  0x27   : > { %p1710_p7 = scmp.ne.s32.totalorder %s179_s29, %s1709_s12  ;;  %p1718_p6 = scmp.lt.s32.totalorder %s1709_s12, %s1709_s12 }
  0x29   : > { %p1712_p9 = pnand %p1710_p7, %p1698_p12  ;;  %p1719_p4 = por %p1718_p6, %p1717_p2 }
  0x2b   : > { %p1713_p1 = pneg %p1712_p9 }
  0x2d   : > { %p1720_p8 = pnand %p1719_p4, %p1713_p1 }
  0x2f   : > { %1723 = shalt.err (!%p1720_p8)
}
  0x30   : > { %s1893_s13 = smov 448   ;;  %s1894_s14 = smov 28  }
  0x31   : > { %1545 = dma.hbm_to_vmem [thread:$0]  (!%p1996_p10), %s2303_s2, 5376, %s179_s29, [#allocation7], %s1893_s13, %s1893_s13, %s1894_s14  }
  0x32   : > { %s32_s5 = sadd.s32 1, %s1882_s20  ;;  %s35_s6 = sadd.s32 1, %s1886_s21 }
  0x33   : > { %p33_p1 = scmp.ge.s32.totalorder %s32_s5, 2  ;;  %s44_s7 = sadd.s32 1, %s1870_s17 }
  0x34   : > { %p51_p2 = scmp.ne.s32.totalorder %s1870_s17, %s1866_s16  ;;  %p52_p4 = scmp.eq.s32.totalorder %s1890_s22, 0 }
  0x35   : > { %s2327_s5 = smov (%p33_p1, %s32_s5), 0  ;;  %s2329_s6 = smov (!%p33_p1, %s35_s6), %s1886_s21 }
  0x36   : > { %2304 = sst [smem:[#allocation16_spill]] %s2327_s5  ;;  %s40_s8 = ssub.s32 %s1882_s20, %s2327_s5 }
  0x37   : > { %p37_p6 = scmp.ge.s32.totalorder %s2329_s6, 2  ;;  %p2305_p8 = scmp.eq.s32.totalorder %s1969_s23, 3 }
  0x38   : > { %p2033_p10 = por %p52_p4, %p51_p2  ;;  %p1558_p12 = scmp.lt.s32.totalorder %s1890_s22, 4 }
  0x39   : > { %p2029_p11 = por %p2305_p8, %p51_p2  ;;  %s2331_s6 = smov (%p37_p6, %s2329_s6), 0 }
  0x3a   : > { %s2041_s9 = sand.u32 1, %s1870_s17   ;;  %s1417_s10 = sshll.u32 %s1886_s21, 1 }
  0x3b   : > { %s2306_s30 = scalar_select %p2029_p11, 1, 0 }
  0x3c   : > { %s39_s11 = ssub.s32 %s1886_s21, %s2331_s6  ;;  %s1416_s13 = sshll.u32 %s2041_s9, 1 }
  0x3d   : > { %s41_s12 = sor.u32 %s40_s8, %s39_s11  ;;  %s2048_s14 = sadd.s32 %s1882_s20, %s1417_s10 }
  0x3e   : > { %p42_p13 = scmp.eq.s32.totalorder %s41_s12, 0  ;;  %s199_s24 = scalar_lea.vmem [#allocation3], %s1416_s13 }
  0x3f   : > { %s208_s28 = sshll.u32 %s199_s24, 4  ;;  %s1418_s5 = sshll.u32 %s2048_s14, 5  ;;  %s2054_s28 = int_to_ptr.vmem [resolvable:$true] %s208_s28 }
  0x40   : > { %s2051_s2 = scalar_select %p42_p13, %s1870_s17, %s44_s7  }
  0x41   : > { %s2059_s4 = scalar_lea.hbm %s2282_s0, %s1418_s5  ;;  %p2065_p0 = pnand %p1558_p12, %p2033_p10 }
  0x42   : > { %s1420_s7 = sshll.u32 %s2048_s14, 4  ;;  %s215_s10 = sand.u32 1, %s1890_s22  }
  0x43   : > { %s196_s11 = scalar_lea.sflag [#allocation4], %s2041_s9  ;;  %s1724_s12 = scalar_lea.hbm %s2059_s4, 32 }
  0x44   : > { %p1725_p3 = scmp.ne.s32.totalorder %s2059_s4, %s1724_s12  ;;  %p1726_p5 = pneg %p2065_p0 }
  0x45   : > { %s1729_s5 = scalar_lea.hbm %s2282_s0, 128  ;;  %p1730_p1 = scmp.lt.u32.totalorder %s2059_s4, %s2282_s0 }
  0x46   : > { %p1727_p7 = pnand %p1726_p5, %p1725_p3  ;;  %p1731_p2 = scmp.lt.u32.totalorder %s1729_s5, %s1724_s12 }
  0x47   : > { %p1733_p6 = scmp.lt.u32.totalorder %s1724_s12, %s2059_s4 }
  0x48   : > { %p1728_p9 = pneg %p1727_p7  ;;  %p1732_p4 = por %p1731_p2, %p1730_p1 }
  0x4a   : > { %p1734_p8 = por %p1733_p6, %p1732_p4 }
  0x4c   : > { %p1735_p10 = pnand %p1734_p8, %p1728_p9 }
  0x4e   : > { %1738 = shalt.err (!%p1735_p10)
}
  0x4f   : > { %s1739_s24 = scalar_lea.vmem %s2054_s28, 32  ;;  %s1895_s15 = smov [#allocation3]  }
  0x50   : > { %p1740_p12 = scmp.ne.s32.totalorder %s2054_s28, %s1739_s24  ;;  %s1744_s26 = sshll.u32 %s1895_s15, 4  ;;  %s1745_s26 = int_to_ptr.vmem [resolvable:$false] %s1744_s26 }
  0x51   : > { %s1746_s29 = scalar_lea.vmem %s1745_s26, 64  ;;  %p1747_p7 = scmp.lt.s32.totalorder %s2054_s28, %s1745_s26 }
  0x52   : > { %p1742_p13 = pnand %p1740_p12, %p1726_p5  ;;  %p1748_p1 = scmp.lt.s32.totalorder %s1746_s29, %s1739_s24 }
  0x54   : > { %p1743_p3 = pneg %p1742_p13  ;;  %p1749_p2 = por %p1748_p1, %p1747_p7 }
  0x56   : > { %p1750_p4 = pnand %p1749_p2, %p1743_p3 }
  0x58   : > { %1753 = shalt.err (!%p1750_p4)
}
  0x59   : > { %1549 = dma.hbm_to_vmem [thread:$0]  (!%p2065_p0), %s2059_s4, 32, %s2054_s28, %s196_s11  }
  0x5a   : > { %s2102_s13 = scalar_lea.hbm %s2283_s1, %s1420_s7  ;;  %s218_s24 = scalar_lea.vmem [#allocation6], %s2041_s9 }
  0x5b   : > { %s227_s15 = sshll.u32 %s218_s24, 4  ;;  %s216_s26 = scalar_lea.sflag [#allocation7], %s215_s10  ;;  %s228_s15 = int_to_ptr.vmem [resolvable:$true] %s227_s15 }
  0x5c   : > { %s1754_s29 = scalar_lea.hbm %s2102_s13, 16  ;;  %s1759_s28 = scalar_lea.hbm %s2283_s1, 64 }
  0x5d   : > { %p1755_p9 = scmp.ne.s32.totalorder %s2102_s13, %s1754_s29  ;;  %p1760_p10 = scmp.lt.u32.totalorder %s2102_s13, %s2283_s1 }
  0x5e   : > { %p1761_p12 = scmp.lt.u32.totalorder %s1759_s28, %s1754_s29  ;;  %p1763_p3 = scmp.lt.u32.totalorder %s1754_s29, %s2102_s13 }
  0x5f   : > { %p1757_p6 = pnand %p1755_p9, %p1726_p5 }
  0x60   : > { %p1762_p13 = por %p1761_p12, %p1760_p10 }
  0x61   : > { %p1758_p8 = pneg %p1757_p6 }
  0x62   : > { %p1764_p7 = por %p1763_p3, %p1762_p13 }
  0x64   : > { %p1765_p1 = pnand %p1764_p7, %p1758_p8 }
  0x66   : > { %1768 = shalt.err (!%p1765_p1)
}
  0x67   : > { %s1769_s9 = scalar_lea.vmem %s228_s15, 16  ;;  %s1896_s10 = smov [#allocation6]  }
  0x68   : > { %p1770_p2 = scmp.ne.s32.totalorder %s228_s15, %s1769_s9  ;;  %s1774_s12 = sshll.u32 %s1896_s10, 4  ;;  %s1775_s12 = int_to_ptr.vmem [resolvable:$false] %s1774_s12 }
  0x69   : > { %s1776_s5 = scalar_lea.vmem %s1775_s12, 32  ;;  %p1777_p6 = scmp.lt.s32.totalorder %s228_s15, %s1775_s12 }
  0x6a   : > { %p1772_p4 = pnand %p1770_p2, %p1726_p5  ;;  %p1778_p11 = scmp.lt.s32.totalorder %s1776_s5, %s1769_s9 }
  0x6c   : > { %p1773_p9 = pneg %p1772_p4  ;;  %p1779_p10 = por %p1778_p11, %p1777_p6 }
  0x6e   : > { %p1780_p12 = pnand %p1779_p10, %p1773_p9 }
  0x70   : > { %1783 = shalt.err (!%p1780_p12)
}
  0x71   : > { %1552 = dma.hbm_to_vmem [thread:$0]  (!%p2065_p0), %s2102_s13, 16, %s228_s15, %s216_s26  }
  0x72   : > { %p2309_p8 = scmp.ne.s32.totalorder %s2301_s27, 0 }
  0x73   : > { %s2129_s24 = sand.u32 (!%p2309_p8), 1, %s1866_s16   ;;  %p2310_p11 = scmp.ne.s32.totalorder (!%p2309_p8), %s2298_s25, 0 }
  0x74   : > { %236 = sbr.rel (%p2309_p8) target bundleno = 440 (0x1b8), region = 36  ;;  %s1422_s29 = sshll.u32 (!%p2309_p8), %s2129_s24, 1 }
  0x75   : > { %s239_s4 = scalar_lea.sflag (!%p2309_p8), [#allocation4], %s2129_s24  ;;  %s2133_s14 = scalar_lea.vmem (!%p2309_p8), [#allocation3], %s1422_s29 }
  0x7b   : > { %1845 = dma.done.wait (%p2310_p11), %s239_s4, 32  }
  0x7c   : > { %1847 = vsyncadd (%p2310_p11), %s239_s4, 4294967264  ;;  %s247_s27 = sand.u32 1, %s1969_s23   ;;  %s250_s13 = scalar_lea.vmem [#allocation6], %s2129_s24 }
  0x7d   : > { %s248_s8 = scalar_lea.sflag [#allocation7], %s247_s27 }
  0x7e   : > { %1849 = dma.done.wait (%p2310_p11), %s248_s8, 16  }
  0x7f   : > { %1851 = vsyncadd (%p2310_p11), %s248_s8, 4294967280  ;;  %p2311_p0 = scmp.eq.s32.totalorder %s1969_s23, 0 }
  0x81   : > { %1853 = dma.done.wait (%p2311_p0), [#allocation7], 5376   ;;  %p2312_p5 = pmov %p2311_p0 }
  0x82   : > { %v1897_v0 = vmov 0   ;;  %vm452_vm0 = vcmask 1044480   ;;  %v1633_v1 = vld [vmem:[#allocation8 + $0x74] ss:$28 sps:$4 sm:$0xff]   ;;  %vm286_vm1 = vsmask.f32 256  ;;  %v320_v13 = vlaneseq }
  0x83   : > { %1855 = vsyncadd (%p2312_p5), [#allocation7], 4294961920  ;;  %506 = vmatprep.mubr.bf16.mxu0 %v1897_v0  ;;  %547 = vmatprep.mubr.bf16.mxu1 %v1897_v0  ;;  %v1635_v2 = vld [vmem:[#allocation8 + $0x70] ss:$28 sps:$4 sm:$0xff]   ;;  %v1636_v3 = vld [vmem:[#allocation8 + $0x7c] ss:$28 sps:$4 sm:$0xff]  }
  0x84   : > { %474 = vmatprep.subr.bf16.mxu0 %v1633_v1  ;;  %v1638_v4 = vld [vmem:[#allocation8 + $0x78] ss:$28 sps:$4 sm:$0xff]   ;;  %vm285_vm2 = vcmask 204800   ;;  %v1639_v5 = vld [vmem:[#allocation8 + $0xac] ss:$28 sps:$4 sm:$0x1f]   ;;  %515 = vmatprep.subr.bf16.mxu1 %v1636_v3 }
  0x85   : > { %475 = vmatpush1.bf16.msra.mxu0 %v1635_v2  ;;  %v1641_v6 = vld [vmem:[#allocation8 + $0xa8] ss:$28 sps:$4 sm:$0x1f]   ;;  %516 = vmatpush1.bf16.msra.mxu1 %v1638_v4  ;;  %v1642_v7 = vld [vmem:[#allocation8 + $0xb4] ss:$28 sps:$4 sm:$0x1f]   ;;  %vm287_vm3 = vmand %vm285_vm2, %vm286_vm1 }
  0x86   : > { %1440 = vmatprep.subr.msk.bf16.mxu0 %vm452_vm0, %v1639_v5  ;;  %v1644_v8 = vld [vmem:[#allocation8 + $0xb0] ss:$28 sps:$4 sm:$0x1f]   ;;  %v454_v9 = vsel %vm452_vm0, %v1641_v6, 0  ;;  %v1647_v10 = vld [vmem:[#allocation8 + $0x84] ss:$28 sps:$4 sm:$0xff]   ;;  %1442 = vmatprep.subr.msk.bf16.mxu1 %vm452_vm0, %v1642_v7 }
  0x87   : > { %v1898_v11 = vmov 1935823168   ;;  %v460_v14 = vsel %vm452_vm0, %v1644_v8, 0  ;;  %v284_v15 = vld [vmem:[%s250_s13] sm:$0x1]  ;;  %v2158_v22 = vshrl.u32 %v320_v13, 7 }
  0x88   : > { %v318_v12 = vunpack.c.l.s4 %v1898_v11  ;;  %v288_v16 = vld [vmem:[#allocation2] sm:$0x1]  ;;  %v1424_v18 = vld.sshfl [vmem:[%s2133_s14] sm:$0x3 pattern:$0x76325410] }
  0x89   : > { %477 = vmatpush1.bf16.msra.mxu0 %v454_v9  ;;  %v289_v17 = vsel %vm287_vm3, %v284_v15, %v288_v16  ;;  %518 = vmatpush1.bf16.msra.mxu1 %v460_v14  ;;  %v301_v19 = vshrl.u32 %v1424_v18, 16  ;;  %v304_v20 = vshll.u32 %v1424_v18, 16  ;;  %v1899_v23 = vmov 0.0   ;;  %v1648_v26 = vld [vmem:[%s250_s13] ss:$0 sps:$4 sm:$0x11]  }
  0x8a   : > { %556 = vmatprep.subr.bf16.mxu0 %v1647_v10  ;;  %290 = vst [vmem:[#allocation2] sm:$0x1] %v289_v17  ;;  %v319_v21 = vunpack.c.0.s8 %v318_v12  ;;  %1505 = vmatprep.subr.bf16.mxu1 %v1899_v23  ;;  %vm308_vm4 = vcmask 206848   ;;  %vm309_vm5 = vsmask.f32 2306  ;;  %vm332_vm7 = vcmask 206850  }
  0x8b   : > { %v303_v24 = vrot.slane %v301_v19, 7  ;;  %vm310_vm6 = vmand %vm308_vm4, %vm309_vm5  ;;  %vm333_vm8 = vsmask.f32 7946  ;;  %v1645_v37 = vld [vmem:[#allocation8 + $0x80] ss:$28 sps:$4 sm:$0xff]   ;;  %vm448_vm10 = vcmask 211968  }
  0x8c   : > { %v322_v27 = vsub.s32 %v319_v21, %v2158_v22  ;;  %vm334_vm9 = vmand %vm332_vm7, %vm333_vm8  ;;  %v1650_v39 = vld [vmem:[#allocation8 + $0x88] ss:$28 sps:$4 sm:$0xff]   ;;  %v1651_v40 = vld [vmem:[#allocation8 + $0xbc] ss:$28 sps:$4 sm:$0x1f]   ;;  %vm1900_vm11 = vmmov 0  }
  0x8d   : > { %v306_v25 = vor.u32 %v304_v20, %v303_v24  ;;  %v1653_v42 = vld [vmem:[#allocation8 + $0xb8] ss:$28 sps:$4 sm:$0x1f]   ;;  %v1654_v43 = vld [vmem:[#allocation8 + $0xc0] ss:$28 sps:$4 sm:$0x1f]  }
  0x8e   : > { %v323_v30 = vrot.slane %v1648_v26, %v322_v27  ;;  %v466_v44 = vsel %vm452_vm0, %v1653_v42, 0  ;;  %v472_v45 = vsel %vm452_vm0, %v1654_v43, 0  ;;  %v1657_v46 = vld [vmem:[#allocation8 + $0x4] ss:$28 sps:$4 sm:$0xff]   ;;  %v1660_v47 = vld [vmem:[#allocation8 + $0xc] ss:$28 sps:$4 sm:$0xff]  }
  0x8f   : > { %v1655_v48 = vld [vmem:[#allocation8] ss:$28 sps:$4 sm:$0xff]   ;;  %v1658_v49 = vld [vmem:[#allocation8 + $0x8] ss:$28 sps:$4 sm:$0xff]   ;;  %v1669_v56 = vld [vmem:[#allocation8 + $0x14] ss:$28 sps:$4 sm:$0xff]  }
  0x90   : > { %v330_v31 = vrot.slane %v323_v30, %v322_v27  ;;  %v1661_v50 = vld [vmem:[#allocation8 + $0x3c] ss:$28 sps:$4 sm:$0x1f]   ;;  %v1664_v52 = vld [vmem:[#allocation8 + $0x44] ss:$28 sps:$4 sm:$0x1f]  }
  0x91   : > { %v311_v28 = vld [vmem:[#allocation2] sm:$0x7]  ;;  %v1666_v53 = vld [vmem:[#allocation8 + $0x40] ss:$28 sps:$4 sm:$0x1f]   ;;  %s1529_s15 = smul.u32 14, %s2129_s24 }
  0x92   : > { %v312_v29 = vsel %vm310_vm6, %v306_v25, %v311_v28  ;;  %v1663_v51 = vld [vmem:[#allocation8 + $0x38] ss:$28 sps:$4 sm:$0x1f]   ;;  %v712_v55 = vsel %vm452_vm0, %v1666_v53, 0  ;;  %v1667_v57 = vld [vmem:[#allocation8 + $0x10] ss:$28 sps:$4 sm:$0xff]  }
  0x93   : > { %313 = vst [vmem:[#allocation2] sm:$0x7] %v312_v29  ;;  %v706_v54 = vsel %vm452_vm0, %v1663_v51, 0  ;;  %v1670_v58 = vld [vmem:[#allocation8 + $0x18] ss:$28 sps:$4 sm:$0xff]   ;;  %s1530_s26 = smul.u32 7, %s1874_s18 }
  0x94   : > { %v1671_v60 = vld [vmem:[#allocation8 + $0x4c] ss:$28 sps:$4 sm:$0x1f]   ;;  %v1677_v2 = vld [vmem:[#allocation8 + $0xe4] ss:$28 sps:$4 sm:$0xff]   ;;  %s1531_s28 = smul.u32 14, %s1878_s19 }
  0x95   : > { %v1673_v61 = vld [vmem:[#allocation8 + $0x48] ss:$28 sps:$4 sm:$0x1f]   ;;  %v1674_v62 = vld [vmem:[#allocation8 + $0x50] ss:$28 sps:$4 sm:$0x1f]  }
  0x96   : > { %v718_v63 = vsel %vm452_vm0, %v1673_v61, 0  ;;  %v724_v1 = vsel %vm452_vm0, %v1674_v62, 0  ;;  %v1680_v3 = vld [vmem:[#allocation8 + $0xec] ss:$28 sps:$4 sm:$0xff]   ;;  %v1675_v4 = vld [vmem:[#allocation8 + $0xe0] ss:$28 sps:$4 sm:$0xff]   ;;  %s1290_s18 = sadd.s32 %s1531_s28, %s1530_s26 }
  0x97   : > { %v1678_v5 = vld [vmem:[#allocation8 + $0xe8] ss:$28 sps:$4 sm:$0xff]   ;;  %v1681_v6 = vld [vmem:[#allocation8 + $0x11c] ss:$28 sps:$4 sm:$0x1f]   ;;  %v1174_v61 = vsub.s32 0, %v2158_v22 }
  0x98   : > { %v1683_v7 = vld [vmem:[#allocation8 + $0x118] ss:$28 sps:$4 sm:$0x1f]   ;;  %v1684_v8 = vld [vmem:[#allocation8 + $0x124] ss:$28 sps:$4 sm:$0x1f]  }
  0x99   : > { %v1686_v9 = vld [vmem:[#allocation8 + $0x120] ss:$28 sps:$4 sm:$0x1f]   ;;  %v980_v11 = vsel %vm452_vm0, %v1683_v7, 0  ;;  %v1689_v13 = vld [vmem:[#allocation8 + $0xf4] ss:$28 sps:$4 sm:$0xff]  }
  0x9a   : > { %v335_v32 = vld [vmem:[#allocation2] sm:$0x4]  ;;  %v1649_v34 = vld [vmem:[#allocation2] ss:$0 sps:$4 sm:$0x77]   ;;  %v986_v12 = vsel %vm452_vm0, %v1686_v9, 0 }
  0x9b   : > { %v336_v33 = vsel %vm334_vm9, %v330_v31, %v335_v32  ;;  %v377_v35 = vshrl.u32 %v1649_v34, 16  ;;  %v379_v36 = vshll.u32 %v1649_v34, 16  ;;  %v338_v59 = vld [vmem:[#allocation2] sm:$0x3]  ;;  %v1687_v14 = vld [vmem:[#allocation8 + $0xf0] ss:$28 sps:$4 sm:$0xff]  }
  0x9c   : > { %337 = vst [vmem:[#allocation2] sm:$0x4] %v336_v33  ;;  %v1690_v10 = vld [vmem:[#allocation2] ss:$0 sps:$4 sm:$0x66]   ;;  %v1182_v62 = vsub.s32 2, %v2158_v22 }
  0x9d   : > { %v381_v38 = vrot.slane %v379_v36, 1  ;;  %v910_v15 = vrot.slane %v1690_v10, 1  ;;  %v1691_v16 = vld [vmem:[#allocation8 + $0xf8] ss:$28 sps:$4 sm:$0xff]   ;;  %vm1271_vm12 = vcmask 1041408   ;;  %vm1272_vm13 = vcmask 1043458  }
  0x9e   : > { %v1692_v17 = vld [vmem:[#allocation8 + $0x12c] ss:$28 sps:$4 sm:$0x1f]   ;;  %s282_s7 = scalar_lea.vmem [#allocation9], %s1529_s15  ;;  %vm1273_vm14 = vmor %vm1272_vm13, %vm1271_vm12  ;;  %vm1274_vm15 = vcmask 521220   ;;  %s1493_s19 = sshll.u32 %s1290_s18, 5 }
  0x9f   : > { %v382_v41 = vor.u32 %v381_v38, %v377_v35  ;;  %v1694_v18 = vld [vmem:[#allocation8 + $0x128] ss:$28 sps:$4 sm:$0x1f]   ;;  %v1695_v19 = vld [vmem:[#allocation8 + $0x130] ss:$28 sps:$4 sm:$0x1f]  }
  0xa0   : > { %v992_v20 = vsel %vm452_vm0, %v1694_v18, 0  ;;  %v998_v21 = vsel %vm452_vm0, %v1695_v19, 0  ;;  %s1294_s11 = sshll.u32 %s282_s7, 4  ;;  %s2313_s12 = sld [smem:[#allocation18_spill]]  ;;  %s2230_s11 = int_to_ptr.vmem [resolvable:$true] %s1294_s11 }
  0xa1   : > { %1441 = vmatmul.mubr.msk.bf16.vlgmr.msra.gmra.mrb[0].mxu0 %vm448_vm10, %v382_v41  ;;  %1443 = vmatmul.mubr.msk.bf16.vlgmr.msra.gmra.mrb[0].mxu1 %vm448_vm10, %v382_v41  ;;  %s1278_s29 = scalar_lea.sflag [#allocation5], %s2129_s24  ;;  %s1784_s4 = scalar_lea.vmem %s2230_s11, 224 }
  0xa2   : > { %557 = vmatpush1.bf16.msra.mxu0 %v1645_v37  ;;  %1506 = vmatpush3.bf16.msra.mxu1 %v1650_v39  ;;  %p1785_p13 = scmp.ne.s32.totalorder %s2230_s11, %s1784_s4  ;;  %p2314_p3 = scmp.ne.s32.totalorder %s2306_s30, 0 }
  0xa3   : > { %1444 = vmatprep.subr.msk.bf16.mxu0 %vm452_vm0, %v1651_v40  ;;  %1507 = vmatprep.subr.bf16.mxu1 %v1899_v23  ;;  %s1902_s14 = smov [#allocation9]  }
  0xa4   : > { %588 = vmatprep.mubr.bf16.mxu0 %v1897_v0  ;;  %1509 = vmatprep.mubr.msk.bf16.mxu1 %vm1900_vm11, %v1899_v23  ;;  %p1786_p7 = pnand %p1785_p13, %p2314_p3  ;;  %s1788_s27 = sshll.u32 %s1902_s14, 4  ;;  %s1789_s27 = int_to_ptr.vmem [resolvable:$false] %s1788_s27 }
  0xa5   : > { %s1790_s8 = scalar_lea.vmem %s1789_s27, 448  ;;  %p1791_p2 = scmp.lt.s32.totalorder %s2230_s11, %s1789_s27 }
  0xa6   : > { %559 = vmatpush1.bf16.msra.mxu0 %v466_v44  ;;  %1508 = vmatpush3.bf16.msra.mxu1 %v472_v45  ;;  %s2228_s5 = scalar_lea.hbm %s2313_s12, %s1493_s19  ;;  %p1787_p1 = pneg %p1786_p7 }
  0xa7   : > { %726 = vmatprep.subr.bf16.mxu0 %v1657_v46  ;;  %767 = vmatprep.subr.bf16.mxu1 %v1660_v47  ;;  %p1792_p4 = scmp.lt.s32.totalorder %s1790_s8, %s1784_s4 }
  0xa9   : > { %1445 = vmatmul.mubr.msk.bf16.vlgmr.msra.gmra.mrb[4].mxu0 %vm448_vm10, %v382_v41  ;;  %1510 = vmatmul.mubr.msk.bf16.vlgmr.msra.gmra.mrb[4].mxu1 %vm448_vm10, %v382_v41  ;;  %p1793_p9 = por %p1792_p4, %p1791_p2 }
  0xaa   : > { %727 = vmatpush1.bf16.msra.mxu0 %v1655_v48  ;;  %768 = vmatpush1.bf16.msra.mxu1 %v1658_v49 }
  0xab   : > { %1461 = vmatprep.subr.msk.bf16.mxu0 %vm452_vm0, %v1661_v50  ;;  %1463 = vmatprep.subr.msk.bf16.mxu1 %vm452_vm0, %v1664_v52  ;;  %p1794_p6 = pnand %p1793_p9, %p1787_p1 }
  0xac   : > { %758 = vmatprep.mubr.bf16.mxu0 %v1897_v0  ;;  %799 = vmatprep.mubr.bf16.mxu1 %v1897_v0 }
  0xae   : > { %729 = vmatpush1.bf16.msra.mxu0 %v706_v54  ;;  %770 = vmatpush1.bf16.msra.mxu1 %v712_v55 }
  0xaf   : > { %808 = vmatprep.subr.bf16.mxu0 %v1669_v56  ;;  %1513 = vmatprep.subr.bf16.mxu1 %v1899_v23 }
  0xb1   : > { %1462 = vmatmul.mubr.msk.bf16.vlgmr.msra.gmra.mrb[8].mxu0 %vm448_vm10, %v338_v59  ;;  %1464 = vmatmul.mubr.msk.bf16.vlgmr.msra.gmra.mrb[8].mxu1 %vm448_vm10, %v338_v59 }
  0xb2   : > { %809 = vmatpush1.bf16.msra.mxu0 %v1667_v57  ;;  %1514 = vmatpush3.bf16.msra.mxu1 %v1670_v58 }
  0xb3   : > { %1465 = vmatprep.subr.msk.bf16.mxu0 %vm452_vm0, %v1671_v60  ;;  %1515 = vmatprep.subr.bf16.mxu1 %v1899_v23 }
  0xb4   : > { %840 = vmatprep.mubr.bf16.mxu0 %v1897_v0  ;;  %1517 = vmatprep.mubr.msk.bf16.mxu1 %vm1900_vm11, %v1899_v23 }
  0xb6   : > { %811 = vmatpush1.bf16.msra.mxu0 %v718_v63  ;;  %1516 = vmatpush3.bf16.msra.mxu1 %v724_v1  ;;  %v1170_v63 = vld [vmem:[%s2285_s3] sm:$0x7f]  ;;  %v1178_v1 = vsub.s32 1, %v2158_v22 }
  0xb7   : > { %1000 = vmatprep.subr.bf16.mxu0 %v1677_v2  ;;  %1041 = vmatprep.subr.bf16.mxu1 %v1680_v3  ;;  %v1186_v2 = vsub.s32 3, %v2158_v22  ;;  %v1901_v3 = vmov 1983009808  }
  0xb8   : > { %v1179_v9 = vrot.slane %v1170_v63, %v1178_v1 }
  0xb9   : > { %1466 = vmatmul.mubr.msk.bf16.vlgmr.msra.gmra.mrb[12].mxu0 %vm448_vm10, %v338_v59  ;;  %1518 = vmatmul.mubr.msk.bf16.vlgmr.msra.gmra.mrb[12].mxu1 %vm448_vm10, %v338_v59  ;;  %v1187_v10 = vrot.slane %v1170_v63, %v1186_v2 }
  0xba   : > { %1001 = vmatpush1.bf16.msra.mxu0 %v1675_v4  ;;  %1042 = vmatpush1.bf16.msra.mxu1 %v1678_v5  ;;  %v1238_v4 = vunpack.c.l.s4 %v1901_v3  ;;  %v1175_v5 = vrot.slane %v1170_v63, %v1174_v61 }
  0xbb   : > { %1483 = vmatprep.subr.msk.bf16.mxu0 %vm452_vm0, %v1681_v6  ;;  %1485 = vmatprep.subr.msk.bf16.mxu1 %vm452_vm0, %v1684_v8  ;;  %v1183_v6 = vrot.slane %v1170_v63, %v1182_v62 }
  0xbc   : > { %1032 = vmatprep.mubr.bf16.mxu0 %v1897_v0  ;;  %1073 = vmatprep.mubr.bf16.mxu1 %v1897_v0 }
  0xbe   : > { %1003 = vmatpush1.bf16.msra.mxu0 %v980_v11  ;;  %1044 = vmatpush1.bf16.msra.mxu1 %v986_v12 }
  0xbf   : > { %1082 = vmatprep.subr.bf16.mxu0 %v1689_v13  ;;  %1521 = vmatprep.subr.bf16.mxu1 %v1899_v23 }
  0xc1   : > { %1484 = vmatmul.mubr.msk.bf16.vlgmr.msra.gmra.mrb[16].mxu0 %vm448_vm10, %v910_v15  ;;  %1486 = vmatmul.mubr.msk.bf16.vlgmr.msra.gmra.mrb[16].mxu1 %vm448_vm10, %v910_v15 }
  0xc2   : > { %1083 = vmatpush1.bf16.msra.mxu0 %v1687_v14  ;;  %1522 = vmatpush3.bf16.msra.mxu1 %v1691_v16  ;;  %v1239_v16 = vunpack.c.0.s8 %v1238_v4 }
  0xc3   : > { %1487 = vmatprep.subr.msk.bf16.mxu0 %vm452_vm0, %v1692_v17  ;;  %1523 = vmatprep.subr.bf16.mxu1 %v1899_v23  ;;  %vm1275_vm0 = vmor %vm1274_vm15, %vm1273_vm14 }
  0xc4   : > { %1114 = vmatprep.mubr.bf16.mxu0 %v1897_v0  ;;  %1525 = vmatprep.mubr.msk.bf16.mxu1 %vm1900_vm11, %v1899_v23 }
  0xc6   : > { %1085 = vmatpush1.bf16.msra.mxu0 %v992_v20  ;;  %1524 = vmatpush3.bf16.msra.mxu1 %v998_v21 }
  0xc9   : > { %1488 = vmatmul.mubr.msk.bf16.vlgmr.msra.gmra.mrb[20].mxu0 %vm448_vm10, %v910_v15  ;;  %1526 = vmatmul.mubr.msk.bf16.vlgmr.msra.gmra.mrb[20].mxu1 %vm448_vm10, %v910_v15 }
 0x174   : > { %v508_v24 = vpop.f32.mrb[0].mxu0  ;;  %v549_v25 = vpop.f32.mrb[0].mxu1 }
 0x175   : > { %v510_v26 = vpop.f32.mrb[1].mxu0  ;;  %v551_v27 = vpop.f32.mrb[1].mxu1 }
 0x176   : > { %v512_v28 = vpop.f32.mrb[2].mxu0  ;;  %v553_v29 = vpop.f32.mrb[2].mxu1 }
 0x177   : > { %v513_v30 = vpop.f32.mrb[3].mxu0  ;;  %v554_v31 = vpop.f32.mrb[3].mxu1 }
 0x178   : > { %v1194_v30 = vsub.s32 5, %v2158_v22 }
 0x17c   : > { %v590_v32 = vpop.f32.mrb[4].mxu0  ;;  %v631_v33 = vpop.f32.mrb[4].mxu1 }
 0x17d   : > { %v592_v0 = vpop.f32.mrb[5].mxu0  ;;  %v1511_v34 = vpop.f32.mrb[5].mxu1 }
 0x17e   : > { %v594_v35 = vpop.f32.mrb[6].mxu0  ;;  %v634_v23 = vpop.f32.mrb[6].mxu1 }
 0x17f   : > { %v595_v36 = vpop.f32.mrb[7].mxu0  ;;  %v1512_v37 = vpop.f32.mrb[7].mxu1 }
 0x184   : > { %v760_v38 = vpop.f32.mrb[8].mxu0  ;;  %v801_v39 = vpop.f32.mrb[8].mxu1 }
 0x185   : > { %v761_v40 = vadd.f32 %v760_v38, %v508_v24  ;;  %v802_v41 = vadd.f32 %v801_v39, %v549_v25  ;;  %v762_v42 = vpop.f32.mrb[9].mxu0  ;;  %v803_v43 = vpop.f32.mrb[9].mxu1 }
 0x186   : > { %v763_v44 = vadd.f32 %v762_v42, %v510_v26  ;;  %v804_v45 = vadd.f32 %v803_v43, %v551_v27  ;;  %v764_v46 = vpop.f32.mrb[10].mxu0  ;;  %v805_v47 = vpop.f32.mrb[10].mxu1  ;;  %v1190_v26 = vsub.s32 4, %v2158_v22  ;;  %v1198_v27 = vsub.s32 6, %v2158_v22 }
 0x187   : > { %v765_v48 = vpop.f32.mrb[11].mxu0  ;;  %v806_v49 = vpop.f32.mrb[11].mxu1 }
 0x188   : > { %v1191_v35 = vrot.slane %v1170_v63, %v1190_v26  ;;  %v1199_v23 = vrot.slane %v1170_v63, %v1198_v27 }
 0x18c   : > { %v842_v50 = vpop.f32.mrb[12].mxu0  ;;  %v883_v51 = vpop.f32.mrb[12].mxu1 }
 0x18d   : > { %v843_v52 = vadd.f32 %v842_v50, %v590_v32  ;;  %v884_v53 = vadd.f32 %v883_v51, %v631_v33  ;;  %v844_v54 = vpop.f32.mrb[13].mxu0  ;;  %v1519_v55 = vpop.f32.mrb[13].mxu1 }
 0x18e   : > { %v845_v56 = vadd.f32 %v844_v54, %v592_v0  ;;  %v846_v57 = vpop.f32.mrb[14].mxu0  ;;  %v886_v58 = vpop.f32.mrb[14].mxu1  ;;  %v1242_v0 = vsub.s32 %v1239_v16, %v2158_v22 }
 0x18f   : > { %v847_v59 = vpop.f32.mrb[15].mxu0  ;;  %v1520_v60 = vpop.f32.mrb[15].mxu1 }
 0x194   : > { %v1034_v7 = vpop.f32.mrb[16].mxu0  ;;  %v1075_v8 = vpop.f32.mrb[16].mxu1 }
 0x195   : > { %v1163_v11 = vadd.f32 %v1034_v7, %v761_v40  ;;  %v1165_v12 = vadd.f32 %v1075_v8, %v802_v41  ;;  %v1036_v13 = vpop.f32.mrb[17].mxu0  ;;  %v1077_v14 = vpop.f32.mrb[17].mxu1  ;;  %v1195_v40 = vrot.slane %v1170_v63, %v1194_v30 }
 0x196   : > { %v1164_v15 = vadd.f32 %v1036_v13, %v763_v44  ;;  %v1166_v17 = vadd.f32 %v1077_v14, %v804_v45  ;;  %v1038_v18 = vpop.f32.mrb[18].mxu0  ;;  %v1079_v19 = vpop.f32.mrb[18].mxu1 }
 0x197   : > { %v1207_v20 = vadd.f32 %v1175_v5, %v1163_v11  ;;  %v1209_v21 = vadd.f32 %v1183_v6, %v1165_v12  ;;  %v1039_v24 = vpop.f32.mrb[19].mxu0  ;;  %v1080_v25 = vpop.f32.mrb[19].mxu1 }
 0x198   : > { %v1208_v28 = vadd.f32 %v1179_v9, %v1164_v15  ;;  %v1210_v29 = vadd.f32 %v1187_v10, %v1166_v17 }
 0x199   : > { %v1214_v31 = vmax.f32 %v1207_v20, 0.0  ;;  %v1216_v32 = vmax.f32 %v1209_v21, 0.0 }
 0x19a   : > { %v1215_v33 = vmax.f32 %v1208_v28, 0.0  ;;  %v1217_v34 = vmax.f32 %v1210_v29, 0.0 }
 0x19c   : > { %v1490_v36 = vpack.c.bf16 %v1215_v33, %v1214_v31  ;;  %v1491_v37 = vpack.c.bf16 %v1217_v34, %v1216_v32  ;;  %v1116_v38 = vpop.f32.mrb[20].mxu0  ;;  %v1157_v39 = vpop.f32.mrb[20].mxu1 }
 0x19d   : > { %v1167_v41 = vadd.f32 %v1116_v38, %v843_v52  ;;  %v1169_v42 = vadd.f32 %v1157_v39, %v884_v53  ;;  %v1118_v43 = vpop.f32.mrb[21].mxu0  ;;  %v1527_v44 = vpop.f32.mrb[21].mxu1 }
 0x19e   : > { %v1243_v45 = vrot.slane %v1490_v36, %v1242_v0  ;;  %v1250_v46 = vrot.slane %v1491_v37, %v1242_v0  ;;  %v1168_v47 = vadd.f32 %v1118_v43, %v845_v56  ;;  %v1120_v48 = vpop.f32.mrb[22].mxu0  ;;  %v1160_v22 = vpop.f32.mrb[22].mxu1 }
 0x19f   : > { %v1211_v49 = vadd.f32 %v1191_v35, %v1167_v41  ;;  %v1213_v50 = vadd.f32 %v1199_v23, %v1169_v42  ;;  %v1121_v51 = vpop.f32.mrb[23].mxu0  ;;  %v1528_v54 = vpop.f32.mrb[23].mxu1 }
 0x1a0   : > { %v1251_v55 = vcombine.low %v1243_v45, %v1250_v46  ;;  %v1212_v57 = vadd.f32 %v1195_v40, %v1168_v47 }
 0x1a1   : > { %v1218_v58 = vmax.f32 %v1211_v49, 0.0  ;;  %v1220_v59 = vmax.f32 %v1213_v50, 0.0 }
 0x1a2   : > { %v1219_v52 = vmax.f32 %v1212_v57, 0.0  ;;  %1270 = vst [vmem:[%s282_s7] sm:$0xff] %v1251_v55 }
 0x1a3   : > { %v1227_v53 = vpack.c.bf16 %v1220_v59, %v1220_v59 }
 0x1a4   : > { %v1492_v56 = vpack.c.bf16 %v1219_v52, %v1218_v58 }
 0x1a5   : > { %v1266_v60 = vrot.slane %v1227_v53, %v1242_v0 }
 0x1a6   : > { %v1259_v61 = vrot.slane %v1492_v56, %v1242_v0 }
 0x1a8   : > { %v1267_v62 = vcombine.low %v1259_v61, %v1266_v60 }
 0x1aa   : > { %1276 = vst.msk [vmem:[%s282_s7 + $0x8] sm:$0x3f] %vm1275_vm0, %v1267_v62 }
 0x1ab   : > { %1797 = shalt.err (!%p1794_p6)
}
 0x1ac   : > { %s1798_s24 = scalar_lea.hbm %s2228_s5, 224  ;;  %s1802_s25 = scalar_lea.hbm %s2313_s12, 896 }
 0x1ad   : > { %p1799_p10 = scmp.ne.s32.totalorder %s2228_s5, %s1798_s24  ;;  %p1803_p11 = scmp.lt.u32.totalorder %s2228_s5, %s2313_s12 }
 0x1ae   : > { %p1804_p0 = scmp.lt.u32.totalorder %s1802_s25, %s1798_s24  ;;  %p1806_p13 = scmp.lt.u32.totalorder %s1798_s24, %s2228_s5 }
 0x1af   : > { %p1800_p12 = pnand %p1799_p10, %p2314_p3 }
 0x1b0   : > { %p1805_p5 = por %p1804_p0, %p1803_p11 }
 0x1b1   : > { %p1801_p8 = pneg %p1800_p12 }
 0x1b2   : > { %p1807_p7 = por %p1806_p13, %p1805_p5 }
 0x1b4   : > { %p1808_p1 = pnand %p1807_p7, %p1801_p8 }
 0x1b6   : > { %1811 = shalt.err (!%p1808_p1)
}
 0x1b7   : > { %1540 = dma.vmem_to_hbm [thread:$0]  (%p2314_p3), %s2230_s11, 224, %s2228_s5, %s1278_s29  }
 0x1b8 PF: > { %s2315_s28 = sld [smem:[#allocation14_spill]]  ;;  %s2316_s7 = sld [smem:[#allocation15_spill]] }
 0x1b9   : > { %p1560_p2 = scmp.ge.s32.totalorder %s1890_s22, 2 }
 0x1be   : > { %s1306_s18 = sand.u32 1, %s2315_s28   ;;  %p2317_p4 = scmp.ne.s32.totalorder %s2316_s7, 0 }
 0x1bf   : > { %s1307_s19 = scalar_lea.sflag [#allocation5], %s1306_s18 }
 0x1c0   : > { %p1554_p9 = pnand %p1560_p2, %p2317_p4 }
 0x1c2   : > { %1857 = dma.done.wait (!%p1554_p9), %s1307_s19, 224  }
 0x1c3   : > { %1859 = vsyncadd (!%p1554_p9), %s1307_s19, 4294967072  ;;  %s23_s22 = sadd.s32 1, %s1890_s22   ;;  %s2318_s30 = sld [smem:[#allocation16_spill]] }
 0x1c4   : > { %p20_p6 = scmp.ge.s32.totalorder %s23_s22, 6   ;;  %s2319_s15 = smov %s1866_s16 }
 0x1c5   : > { %s2320_s16 = smov %s1870_s17  ;;  %s2321_s17 = smov %s2051_s2 }
 0x1c6   : > { %s2322_s18 = smov %s1882_s20  ;;  %s2323_s19 = smov %s1886_s21 }
 0x1c7   : > { %s2325_s21 = smov %s2331_s6  ;;  %22 = sbr.rel (!%p20_p6) target bundleno = 12 (0xc), region = 100 }
 0x1c9   : > { %s2324_s20 = smov %s2318_s30 }
 0x1ce   :  { %1312 = vsyncpa [#allocation4], 1 }
 0x1cf   :  { %1314 = vsyncpa [#allocation4 + $0x1], 1 }
 0x1d0   :  { %1315 = vsyncpa [#allocation7], 1 }
 0x1d1   :  { %1317 = vsyncpa [#allocation7 + $0x1], 1 }
 0x1d2   :  { %1318 = vsyncpa [#allocation5], 1 }
 0x1d3   :  { %1320 = vsyncpa [#allocation5 + $0x1], 1 }

</bundles_post_ra>
